<compile_context>
chip_gen: v7x
topology: tpu7x:2x2x1
jax: 0.10.0
libtpu: 0.0.40
codegen_flags: <defaults>
</compile_context>

<pallas_src>
import jax
import jax.numpy as jnp
from jax.experimental import pallas as pl
from jax.experimental.pallas import tpu as pltpu


# ----------------------------------------------------------------------------
# Pallas kernel
# ----------------------------------------------------------------------------

def _outconv_kernel(x_ref, w_ref, b_ref, o_ref):
    """One pixel-tile step of the 1x1 conv.

    x_ref: (NB, Cin, TP)   input slab: channels on sublanes, pixels on lanes
    w_ref: (Cout, Cin)     1x1 conv weight
    b_ref: (Cout, 1)       bias (broadcast across the lane axis)
    o_ref: (NB, Cout, TP)  lane-dense output slab
    """
    w = w_ref[...]
    b = b_ref[...]
    # NB is a small static int; the static Python loop issues independent MXU
    # matmuls on slices of the already-resident VMEM block.
    for i in range(x_ref.shape[0]):
        y = jnp.dot(w, x_ref[i], preferred_element_type=jnp.float32)
        o_ref[i] = (y + b).astype(o_ref.dtype)


# ----------------------------------------------------------------------------
# Tiling helpers
# ----------------------------------------------------------------------------

_LANE = 128
_VMEM_STEP_BUDGET = 4 * 1024 * 1024   # target bytes of (input + output) per grid step
_ITEMSIZE = 4                          # float32


def _round_up(v, m):
    return -(-v // m) * m


def _pick_pixel_tile(hw, nb, cin, cout):
    """Budget-driven pixel tile: a multiple of 128, cdiv-padded tail allowed."""
    if hw <= _LANE:
        return hw  # block equal to the full array dim is always legal
    bytes_per_pixel = _ITEMSIZE * nb * (cin + cout)
    tp = max(_LANE, (_VMEM_STEP_BUDGET // bytes_per_pixel) // _LANE * _LANE)
    # Keep >=2 pixel-tile grid steps so both v7x TensorCores get work even
    # when the batch axis doesn't provide parallelism.
    tp = min(tp, _round_up((hw + 1) // 2, _LANE))
    # Never larger than the (padded) full pixel extent.
    tp = min(tp, _round_up(hw, _LANE))
    return tp


# ----------------------------------------------------------------------------
# Wrapper
# ----------------------------------------------------------------------------

def outconv_forward(x, w2d, b2d):
    """x: (N, Cin, H, W) f32; w2d: (Cout, Cin); b2d: (Cout, 1) -> (N, Cout, H, W)."""
    N, Cin, H, W = x.shape
    Cout = w2d.shape[0]
    HW = H * W
    x2 = x.reshape(N, Cin, HW)

    # Fold the whole batch into one grid step when even the minimum pixel tile
    # stays inside the per-step VMEM budget (small-N fast path: halves the
    # grid-step count and issues one larger, more efficient DMA).
    fold_batch = N * _LANE * (Cin + Cout) * _ITEMSIZE <= _VMEM_STEP_BUDGET
    nb = N if fold_batch else 1

    tp = _pick_pixel_tile(HW, nb, Cin, Cout)
    num_tiles = pl.cdiv(HW, tp)

    cost = pl.CostEstimate(
        flops=2 * N * Cout * Cin * HW,
        bytes_accessed=_ITEMSIZE * (N * HW * (Cin + Cout) + Cout * (Cin + 1)),
        transcendentals=0,
    )
    cparams = pltpu.CompilerParams(
        dimension_semantics=("parallel",) if fold_batch else ("parallel", "parallel"),
        # Raise v5e's 16 MiB default scoped limit; ~2x the double-buffered slab
        # and comfortably under v7x's 64 MiB physical VMEM.
        vmem_limit_bytes=40 * 1024 * 1024,
    )

    if fold_batch:
        grid = (num_tiles,)
        in_specs = [
            pl.BlockSpec((N, Cin, tp), lambda t: (0, 0, t)),
            pl.BlockSpec((Cout, Cin), lambda t: (0, 0)),
            pl.BlockSpec((Cout, 1), lambda t: (0, 0)),
        ]
        out_specs = pl.BlockSpec((N, Cout, tp), lambda t: (0, 0, t))
    else:
        grid = (N, num_tiles)
        in_specs = [
            pl.BlockSpec((1, Cin, tp), lambda n, t: (n, 0, t)),
            pl.BlockSpec((Cout, Cin), lambda n, t: (0, 0)),
            pl.BlockSpec((Cout, 1), lambda n, t: (0, 0)),
        ]
        out_specs = pl.BlockSpec((1, Cout, tp), lambda n, t: (n, 0, t))

    out = pl.pallas_call(
        _outconv_kernel,
        out_shape=jax.ShapeDtypeStruct((N, Cout, HW), jnp.float32),
        grid=grid,
        in_specs=in_specs,
        out_specs=out_specs,
        compiler_params=cparams,
        cost_estimate=cost,
    )(x2, w2d, b2d)
    return out.reshape(N, Cout, H, W)


class OutConv:
    """Pallas equivalent of `nn.Conv2d(in_ch, out_ch, kernel_size=1)` forward."""

    def __init__(self, weight, bias):
        # weight: (Cout, Cin, 1, 1) torch layout; bias: (Cout,)
        cout, cin = int(weight.shape[0]), int(weight.shape[1])
        # Hoist all weight prep out of the per-call path (done once here).
        self.w2d = jnp.asarray(weight, jnp.float32).reshape(cout, cin)
        self.b2d = jnp.asarray(bias, jnp.float32).reshape(cout, 1)
        self._fwd = jax.jit(outconv_forward)

    def __call__(self, x):
        return self._fwd(x, self.w2d, self.b2d)


# ----------------------------------------------------------------------------
# Main
# ----------------------------------------------------------------------------

if __name__ == "__main__":
    # UNet-style OutConv: in_ch=16 fused features -> out_ch=2 classes, 16x16.
    N, CIN, COUT, H, W = 2, 16, 2, 16, 16

    key = jax.random.PRNGKey(0)
    kx, kw, kb = jax.random.split(key, 3)
    x = jax.random.normal(kx, (N, CIN, H, W), jnp.float32)
    weight = jax.random.normal(kw, (COUT, CIN, 1, 1), jnp.float32) * (1.0 / CIN ** 0.5)
    bias = jax.random.normal(kb, (COUT,), jnp.float32) * 0.1

    model = OutConv(weight, bias)
    out = jax.block_until_ready(model(x))

    # Pure-JAX reference: y[n,co,h,w] = sum_ci W[co,ci] * x[n,ci,h,w] + b[co]
    ref = (jnp.einsum("oc,nchw->nohw", weight.reshape(COUT, CIN), x)
           + bias.reshape(1, COUT, 1, 1))

    assert out.shape == (N, COUT, H, W), out.shape
    assert bool(jnp.all(jnp.isfinite(out)))
    assert bool(jnp.allclose(out, ref, atol=1e-3, rtol=1e-3))
    print("KERNEL_OK")
</pallas_src>

<mosaic_0001>
module attributes {stable_mosaic.version = 11 : i64} {
  func.func @_outconv_kernel(%arg0: i32, %arg1: memref<2x16x128xf32, #tpu.memory_space<vmem>>, %arg2: memref<2x16xf32, #tpu.memory_space<vmem>>, %arg3: memref<2x1xf32, #tpu.memory_space<vmem>>, %arg4: memref<2x2x128xf32, #tpu.memory_space<vmem>>) attributes {dimension_semantics = [#tpu.dimension_semantics<parallel>], iteration_bounds = array<i64: 2>, scalar_prefetch = 0 : i64, scratch_operands = 0 : i64, tpu.core_type = #tpu.core_type<tc>, window_params = [{transform_indices = @transform_0, window_bounds = array<i64: 2, 16, 128>}, {pipeline_mode = #tpu.pipeline_mode<synchronous>, transform_indices = @transform_1, window_bounds = array<i64: 2, 16>}, {pipeline_mode = #tpu.pipeline_mode<synchronous>, transform_indices = @transform_2, window_bounds = array<i64: 2, 1>}, {transform_indices = @transform_3, window_bounds = array<i64: 2, 2, 128>}]} {
    %c0 = arith.constant 0 : index
    %c0_0 = arith.constant 0 : index
    %0 = vector.load %arg2[%c0, %c0_0] : memref<2x16xf32, #tpu.memory_space<vmem>>, vector<2x16xf32>
    %c0_1 = arith.constant 0 : index
    %c0_2 = arith.constant 0 : index
    %1 = vector.load %arg3[%c0_1, %c0_2] : memref<2x1xf32, #tpu.memory_space<vmem>>, vector<2x1xf32>
    %c0_3 = arith.constant 0 : index
    %c0_4 = arith.constant 0 : index
    %c0_5 = arith.constant 0 : index
    %2 = vector.load %arg1[%c0_3, %c0_4, %c0_5] : memref<2x16x128xf32, #tpu.memory_space<vmem>>, vector<1x16x128xf32>
    %3 = vector.shape_cast %2 : vector<1x16x128xf32> to vector<16x128xf32>
    %cst = arith.constant dense<0.000000e+00> : vector<2x128xf32>
    %4 = tpu.matmul %0, %3, %cst {dimension_numbers = #tpu.dot_dimension_numbers<[1], [0], [0], [1], [0, 0, 1, 1], [], []>} : vector<2x16xf32>, vector<16x128xf32>, vector<2x128xf32> -> vector<2x128xf32>
    %5 = vector.broadcast %1 : vector<2x1xf32> to vector<2x128xf32>
    %6 = arith.addf %4, %5 : vector<2x128xf32>
    %c0_6 = arith.constant 0 : index
    %c0_7 = arith.constant 0 : index
    %c0_8 = arith.constant 0 : index
    %7 = vector.load %arg4[%c0_6, %c0_7, %c0_8] : memref<2x2x128xf32, #tpu.memory_space<vmem>>, vector<1x2x128xf32>
    %8 = vector.shape_cast %7 : vector<1x2x128xf32> to vector<2x128xf32>
    %9 = vector.shape_cast %6 : vector<2x128xf32> to vector<1x2x128xf32>
    tpu.vector_store %arg4[%c0_6, %c0_7, %c0_8], %9 {strides = array<i32>} : memref<2x2x128xf32, #tpu.memory_space<vmem>>, vector<1x2x128xf32>,
    %c1 = arith.constant 1 : index
    %c0_9 = arith.constant 0 : index
    %c0_10 = arith.constant 0 : index
    %10 = vector.load %arg1[%c1, %c0_9, %c0_10] : memref<2x16x128xf32, #tpu.memory_space<vmem>>, vector<1x16x128xf32>
    %11 = vector.shape_cast %10 : vector<1x16x128xf32> to vector<16x128xf32>
    %cst_11 = arith.constant dense<0.000000e+00> : vector<2x128xf32>
    %12 = tpu.matmul %0, %11, %cst_11 {dimension_numbers = #tpu.dot_dimension_numbers<[1], [0], [0], [1], [0, 0, 1, 1], [], []>} : vector<2x16xf32>, vector<16x128xf32>, vector<2x128xf32> -> vector<2x128xf32>
    %13 = vector.broadcast %1 : vector<2x1xf32> to vector<2x128xf32>
    %14 = arith.addf %12, %13 : vector<2x128xf32>
    %c1_12 = arith.constant 1 : index
    %c0_13 = arith.constant 0 : index
    %c0_14 = arith.constant 0 : index
    %15 = vector.load %arg4[%c1_12, %c0_13, %c0_14] : memref<2x2x128xf32, #tpu.memory_space<vmem>>, vector<1x2x128xf32>
    %16 = vector.shape_cast %15 : vector<1x2x128xf32> to vector<2x128xf32>
    %17 = vector.shape_cast %14 : vector<2x128xf32> to vector<1x2x128xf32>
    tpu.vector_store %arg4[%c1_12, %c0_13, %c0_14], %17 {strides = array<i32>} : memref<2x2x128xf32, #tpu.memory_space<vmem>>, vector<1x2x128xf32>,
    return
  }
  func.func @transform_0(%arg0: i32) -> (i32, i32, i32) {
    %c0_i32 = arith.constant 0 : i32
    %c0_i32_0 = arith.constant 0 : i32
    %c0_i32_1 = arith.constant 0 : i32
    return %c0_i32, %c0_i32_0, %arg0 : i32, i32, i32
  }
  func.func @transform_1(%arg0: i32) -> (i32, i32) {
    %c0_i32 = arith.constant 0 : i32
    %c0_i32_0 = arith.constant 0 : i32
    %c0_i32_1 = arith.constant 0 : i32
    return %c0_i32, %c0_i32_0 : i32, i32
  }
  func.func @transform_2(%arg0: i32) -> (i32, i32) {
    %c0_i32 = arith.constant 0 : i32
    %c0_i32_0 = arith.constant 0 : i32
    %c0_i32_1 = arith.constant 0 : i32
    return %c0_i32, %c0_i32_0 : i32, i32
  }
  func.func @transform_3(%arg0: i32) -> (i32, i32, i32) {
    %c0_i32 = arith.constant 0 : i32
    %c0_i32_0 = arith.constant 0 : i32
    %c0_i32_1 = arith.constant 0 : i32
    return %c0_i32, %c0_i32_0, %arg0 : i32, i32, i32
  }
}

</mosaic_0001>

<bundles_post_ra>
// kernel: outconv_forward.1
= control target key start
LH: loop header
LB: loop body
LE: loop exit
PB: predicated region body
PF: predicated region fallthrough
CT: control target
= control target key end

     0   :  { %s591_s12 = smov 0   ;;  %s593_s13 = smov 0   ;;  %s657_s0 = inlined_call_operand.vmem [shape: f32[2,16,256], index: 0, kind: input, shape index: {}]   ;;  %s658_s1 = inlined_call_operand.vmem [shape: f32[2,16], index: 1, kind: input, shape index: {}]   ;;  %s659_s2 = inlined_call_operand.vmem [shape: f32[2,1], index: 2, kind: input, shape index: {}]   ;;  %s660_s3 = inlined_call_operand.vmem [shape: f32[2,2,256], index: 3, kind: output, shape index: {}]  }
   0x1   :  { %s595_s14 = smov 0  }
   0x2 LB: > { %s470_s15 = sadd.s32 4294967295, %s565_s14   ;;  %s608_s16 = sadd.s32 1, %s565_s14   ;;  %s565_s14 = sphi %s595_s14, %s664_s14   ;;  %s561_s13 = sphi %s593_s13, %s663_s13   ;;  %s557_s12 = sphi %s591_s12, %s662_s12  }
   0x3   : > { %s17_s17 = ssub.s32 %s565_s14, %s608_s16  ;;  %s20_s18 = sadd.s32 1, %s561_s13 }
   0x4   : > { %p18_p0 = scmp.eq.s32.totalorder %s17_s17, 0  ;;  %p27_p1 = scmp.ne.s32.totalorder %s561_s13, %s557_s12 }
   0x5   : > { %p28_p2 = scmp.eq.s32.totalorder %s565_s14, 0  ;;  %p99_p3 = scmp.eq.s32.totalorder %s470_s15, 1 }
   0x6   : > { %s619_s19 = scalar_select %p18_p0, %s561_s13, %s20_s18  }
   0x7   : > { %p29_p4 = por %p28_p2, %p27_p1  ;;  %p621_p5 = por %p99_p3, %p27_p1 }
   0x8   : > { %p473_p6 = scmp.ge.s32.totalorder %s565_s14, 2 }
   0xa   : > { %127 = sbr.rel (%p473_p6) target bundleno = 24 (0x18), region = 24 }
  0x11   : > { %130 = sbr.rel (!%p29_p4) target bundleno = 24 (0x18), region = 28  ;;  %s132_s21 = sand.u32 (%p29_p4), 1, %s561_s13  }
  0x12   : > { %s475_s22 = sshll.u32 (%p29_p4), %s565_s14, 3  ;;  %s474_s23 = sshll.u32 (%p29_p4), %s132_s21, 5 }
  0x13   : > { %s136_s26 = scalar_lea.vmem (%p29_p4), %s657_s0, %s475_s22  ;;  %s134_s27 = scalar_lea.vmem (%p29_p4), [#allocation2], %s474_s23 }
  0x14   : > { %v170_v0 = vld [vmem:[%s136_s26] sm:$0xff] (%p29_p4)  ;;  %v172_v1 = vld [vmem:[%s136_s26 + $0x10] sm:$0xff] (%p29_p4) }
  0x15   : > { %v174_v2 = vld [vmem:[%s136_s26 + $0x20] sm:$0xff] (%p29_p4)  ;;  %171 = vst [vmem:[%s134_s27] sm:$0xff] (%p29_p4), %v170_v0  ;;  %173 = vst [vmem:[%s134_s27 + $0x8] sm:$0xff] (%p29_p4), %v172_v1  ;;  %v176_v3 = vld [vmem:[%s136_s26 + $0x30] sm:$0xff] (%p29_p4) }
  0x16   : > { %175 = vst [vmem:[%s134_s27 + $0x10] sm:$0xff] (%p29_p4), %v174_v2  ;;  %177 = vst [vmem:[%s134_s27 + $0x18] sm:$0xff] (%p29_p4), %v176_v3 }
  0x18 PF: > { %p476_p7 = scmp.ge.s32.totalorder %s565_s14, 1  ;;  %p182_p8 = scmp.lt.s32.totalorder %s565_s14, 3 }
  0x1a   : > { %p183_p9 = pnand %p476_p7, %p182_p8 }
  0x1b   : > { %s189_s28 = sand.u32 (!%p183_p9), 1, %s557_s12   ;;  %v567_v4 = vmov (!%p183_p9), 0.0|0.0   ;;  %v212_v5 = vld [vmem:[%s659_s2] sm:$0x3] (!%p183_p9)  ;;  %vm568_vm0 = vmmov (!%p183_p9), 0   ;;  %v569_v6 = vmov (!%p183_p9), 0.0  }
  0x1c   : > { %186 = sbr.rel (%p183_p9) target bundleno = 260 (0x104), region = 66  ;;  %508 = vmatprep.subr.bf16.mxu0 (!%p183_p9), %v567_v4  ;;  %511 = vmatprep.subr.bf16.mxu1 (!%p183_p9), %v567_v4  ;;  %s477_s29 = sshll.u32 (!%p183_p9), %s189_s28, 5  ;;  %v570_v10 = vmov (!%p183_p9), 0   ;;  %v211_v14 = vld [vmem:[%s658_s1] sm:$0x3] (!%p183_p9)  ;;  %vm220_vm1 = vcmask (!%p183_p9), 130048  }
  0x1d   : > { %498 = vmatprep.mubr.msk.f32.mxu0 (!%p183_p9), %vm568_vm0, %v569_v6  ;;  %505 = vmatprep.mubr.msk.f32.mxu1 (!%p183_p9), %vm568_vm0, %v569_v6  ;;  %s191_s5 = scalar_lea.vmem (!%p183_p9), [#allocation2], %s477_s29  ;;  %s478_s8 = sshll.u32 (!%p183_p9), %s189_s28, 2 }
  0x1e   : > { %v213_v7 = vld [vmem:[%s191_s5] sm:$0xff] (!%p183_p9)  ;;  %v214_v8 = vld [vmem:[%s191_s5 + $0x8] sm:$0xff] (!%p183_p9)  ;;  %v480_v9 = vld [vmem:[%s191_s5 + $0x10] sm:$0xff] (!%p183_p9)  ;;  %542 = vset.pattern.permute.xlu0 (!%p183_p9), %v570_v10  ;;  %s210_s9 = scalar_lea.vmem (!%p183_p9), [#allocation3], %s478_s8 }
  0x1f   : > { %v509_v11 = vpack.c.bf16 (!%p183_p9), %v214_v8, %v213_v7  ;;  %v481_v12 = vld [vmem:[%s191_s5 + $0x18] sm:$0xff] (!%p183_p9)  ;;  %217 = vperm.xlu0 (!%p183_p9), %542, %v212_v5  }
  0x20   : > { %v512_v13 = vpack.c.bf16 (!%p183_p9), %v481_v12, %v480_v9 }
  0x21   : > { %510 = vmatpush3.bf16.msra.mxu0 (!%p183_p9), %v509_v11 }
  0x22   : > { %513 = vmatpush3.bf16.msra.mxu1 (!%p183_p9), %v512_v13 }
  0x23   : > { %s485_s10 = sshll.u32 (%p621_p5), %s470_s15, 1 }
  0x24   : > { %499 = vmatmul.mubr.msk.f32.vlgmr.msra.gmra.mrb[0].mxu0 %vm220_vm1, %v211_v14  ;;  %s378_s17 = scalar_lea.vmem (%p621_p5), %s660_s3, %s485_s10 }
  0x25   : > { %506 = vmatmul.mubr.msk.f32.vlgmr.msra.gmra.mrb[0].mxu1 %vm220_vm1, %v211_v14 }
  0x9e   : > { %v218_v15 = vpop.permute.xlu0 %217 }
  0xf5   : > { %376 = sbr.rel (!%p621_p5) target bundleno = 260 (0x104), region = 74 }
  0xf7   : > { %v290_v16 = vpop.f32.mrb[0].mxu0 }
  0xf8   : > { %v291_v17 = vadd.f32 %v290_v16, %v218_v15  ;;  %v364_v18 = vpop.f32.mrb[0].mxu1  ;;  %v500_v19 = vpop.f32.mrb[1].mxu0 }
  0xf9   : > { %v365_v20 = vadd.f32 %v364_v18, %v218_v15  ;;  %v507_v21 = vpop.f32.mrb[1].mxu1 }
  0xfa   : > { %294 = vst [vmem:[%s210_s9] sm:$0x3] %v291_v17 }
  0xfb   : > { %483 = vst [vmem:[%s210_s9 + $0x2] sm:$0x3] %v365_v20 }
 0x101   : > { %v394_v22 = vld [vmem:[%s210_s9] sm:$0x3] }
 0x102   : > { %v396_v23 = vld [vmem:[%s210_s9 + $0x2] sm:$0x3]  ;;  %395 = vst [vmem:[%s378_s17] sm:$0x3] %v394_v22 }
 0x103   : > { %397 = vst [vmem:[%s378_s17 + $0x4] sm:$0x3] %v396_v23 }
 0x104 PF: > { %p10_p10 = scmp.ge.s32.totalorder %s608_s16, 4   ;;  %s662_s12 = smov %s561_s13 }
 0x105   : > { %s663_s13 = smov %s619_s19  ;;  %s664_s14 = smov %s608_s16 }
 0x106   :  { %12 = sbr.rel (!%p10_p10) target bundleno = 2 (0x2), region = 141 }

</bundles_post_ra>
